<compile_context>
chip_gen: v6e
topology: v6e:2x2x1
jax: 0.10.0
libtpu: 0.0.40
codegen_flags: <defaults>
</compile_context>

<pallas_src>
import functools

import jax
import jax.numpy as jnp
from jax.experimental import pallas as pl
from jax.experimental.pallas import tpu as pltpu

LANES = 128
SUBLANES = 8

# Total budget for the double-buffered input blocks: 2 inputs x 2 buffers.
_INPUT_VMEM_BUDGET = 16 * 1024 * 1024
# Explicit scoped-VMEM limit: input buffers + in-kernel spill scratch with
# headroom.  <= v7x scoped default (32 MiB), well under physical VMEM on
# v5e/v6e (128 MiB) and v7x (64 MiB); raises v5e's 16 MiB scoped default.
_VMEM_LIMIT_BYTES = 32 * 1024 * 1024
# Rows per inner streaming chunk inside the kernel (bounds the live f32 diff).
_INNER_ROWS = 512


def _chunk_l1_sum(sr_ref, hr_ref, r0, nrows, row_base, valid_rows, mask_tail):
    """Partial L1 sum of `nrows` rows starting at row `r0` of the tile."""
    s = sr_ref[pl.ds(r0, nrows), :].astype(jnp.float32)
    h = hr_ref[pl.ds(r0, nrows), :].astype(jnp.float32)
    d = jnp.abs(s - h)
    if mask_tail:
        # Sublane-only iota; jnp.where broadcasts the (nrows, 1) mask over lanes.
        rix = jax.lax.broadcasted_iota(jnp.int32, (nrows, 1), 0) + row_base + r0
        d = jnp.where(rix < valid_rows, d, 0.0)
    # (nrows,128) -> (nrows//8, 8, 128), sum over leading axis: pure vreg adds.
    return jnp.sum(d.reshape(nrows // SUBLANES, SUBLANES, LANES), axis=0)


def _l1_partial_kernel(sr_ref, hr_ref, out_ref, *, tm, inner, valid_rows, mask_tail):
    """Per-tile partial L1 sum, reduced only down to an (8,128) f32 slab.

    The tile is consumed in `inner`-row chunks so the f32 diff intermediate is
    never materialized at full tile size; the loop carry is exactly one vreg.
    """
    row_base = pl.program_id(0) * tm
    n_full = tm // inner
    rem = tm - n_full * inner

    acc = jnp.zeros((SUBLANES, LANES), jnp.float32)

    if n_full > 0:
        def body(c, a):
            r0 = pl.multiple_of(c * inner, inner)
            return a + _chunk_l1_sum(
                sr_ref, hr_ref, r0, inner, row_base, valid_rows, mask_tail)
        acc = jax.lax.fori_loop(0, n_full, body, acc, unroll=n_full <= 8)

    if rem > 0:
        acc = acc + _chunk_l1_sum(
            sr_ref, hr_ref, n_full * inner, rem, row_base, valid_rows, mask_tail)

    out_ref[...] = acc


def _round_up(x, m):
    return ((x + m - 1) // m) * m


def _kernel_dtype(dt):
    dt = jnp.dtype(dt)
    if dt in (jnp.dtype(jnp.float32), jnp.dtype(jnp.bfloat16), jnp.dtype(jnp.float16)):
        return dt
    # TODO(synk): exotic dtypes (ints, f64) are cast to f32 in the wrapper,
    # which materializes one extra HBM copy of that operand.
    return jnp.dtype(jnp.float32)


@functools.partial(jax.jit, static_argnames=("tile_rows", "core_parallel"))
def l1_loss(sr, hr, tile_rows=None, core_parallel=False):
    assert sr.shape == hr.shape, "SR and HR must have the same shape"
    n_elems = sr.size

    sr_dt = _kernel_dtype(sr.dtype)
    hr_dt = _kernel_dtype(hr.dtype)
    # Each input keeps its own (narrow) dtype on the HBM->VMEM path; both are
    # upcast to f32 inside the kernel, so mixed dtypes lose no precision.
    sr_flat = sr.reshape(-1) if sr.dtype == sr_dt else sr.reshape(-1).astype(sr_dt)
    hr_flat = hr.reshape(-1) if hr.dtype == hr_dt else hr.reshape(-1).astype(hr_dt)

    sr_item, hr_item = sr_dt.itemsize, hr_dt.itemsize
    align = SUBLANES * (4 // min(sr_item, hr_item))   # 8 rows f32, 16 bf16/f16
    chunk = LANES * align

    main_elems = (n_elems // chunk) * chunk
    rows = main_elems // LANES                        # multiple of `align`

    total = jnp.zeros((), jnp.float32)

    if rows > 0:
        # Common case (typical NCHW sizes): main_elems == n_elems -> no slice at
        # all; ragged sizes take a prefix slice (still no padded full copies).
        sr_main = sr_flat if main_elems == n_elems else sr_flat[:main_elems]
        hr_main = hr_flat if main_elems == n_elems else hr_flat[:main_elems]
        sr2d = sr_main.reshape(rows, LANES)
        hr2d = hr_main.reshape(rows, LANES)

        if tile_rows is None:
            # ~4 MiB per input block: 2 inputs x 2 pipeline buffers = 16 MiB.
            bytes_per_row_buffered = LANES * (sr_item + hr_item) * 2
            tile_rows_eff = max(align, _INPUT_VMEM_BUDGET // bytes_per_row_buffered)
        else:
            tile_rows_eff = tile_rows
        tm = min(_round_up(tile_rows_eff, align), rows)
        inner = min(_INNER_ROWS, tm)
        grid = pl.cdiv(rows, tm)
        mask_tail = (rows % tm) != 0

        kernel = functools.partial(
            _l1_partial_kernel, tm=tm, inner=inner, valid_rows=rows,
            mask_tail=mask_tail)

        cost = pl.CostEstimate(
            flops=3 * main_elems,
            transcendentals=0,
            bytes_accessed=main_elems * (sr_item + hr_item)
            + grid * SUBLANES * LANES * 4,
        )

        # "parallel" everywhere; opt-in CORE_PARALLEL shards the grid across
        # both v7x TensorCores (HBM-bound kernel -> up to ~2x there).
        sem = pltpu.CORE_PARALLEL if core_parallel else "parallel"

        partials = pl.pallas_call(
            kernel,
            out_shape=jax.ShapeDtypeStruct((grid, SUBLANES, LANES), jnp.float32),
            grid_spec=pltpu.PrefetchScalarGridSpec(
                num_scalar_prefetch=0,
                grid=(grid,),
                in_specs=[
                    pl.BlockSpec((tm, LANES), lambda i: (i, 0)),
                    pl.BlockSpec((tm, LANES), lambda i: (i, 0)),
                ],
                # Each grid step owns its own (8, 128) partial-sum slab.
                out_specs=pl.BlockSpec((None, SUBLANES, LANES), lambda i: (i, 0, 0)),
            ),
            compiler_params=pltpu.CompilerParams(
                dimension_semantics=(sem,),
                vmem_limit_bytes=_VMEM_LIMIT_BYTES,
            ),
            cost_estimate=cost,
        )(sr2d, hr2d)
        total = total + jnp.sum(partials)

    tail = n_elems - main_elems
    if tail > 0:
        # < chunk (<= 2047) elements: plain XLA ops, negligible cost.
        sr_t = sr_flat[main_elems:].astype(jnp.float32)
        hr_t = hr_flat[main_elems:].astype(jnp.float32)
        total = total + jnp.sum(jnp.abs(sr_t - hr_t))

    loss = total / jnp.float32(n_elems)
    return {"loss": loss}


if __name__ == "__main__":
    key = jax.random.PRNGKey(0)
    k_sr, k_hr = jax.random.split(key)

    def ref_l1(a, b):
        return jnp.mean(jnp.abs(a.astype(jnp.float32) - b.astype(jnp.float32)))

    # 1) Aligned f32 NCHW (common path: no pad / no slice).
    sr = jax.random.normal(k_sr, (2, 4, 16, 16), dtype=jnp.float32)
    hr = jax.random.normal(k_hr, (2, 4, 16, 16), dtype=jnp.float32)
    loss = jax.block_until_ready(l1_loss(sr, hr)["loss"])
    assert jnp.allclose(loss, ref_l1(sr, hr), rtol=1e-5, atol=1e-6), (loss, ref_l1(sr, hr))

    # 2) Ragged grid tile: rows (24) not a multiple of tile (16) -> in-kernel mask.
    sr2 = jax.random.normal(k_sr, (3, 4, 16, 16), dtype=jnp.float32)
    hr2 = jax.random.normal(k_hr, (3, 4, 16, 16), dtype=jnp.float32)
    loss2 = jax.block_until_ready(l1_loss(sr2, hr2, tile_rows=16)["loss"])
    assert jnp.allclose(loss2, ref_l1(sr2, hr2), rtol=1e-5, atol=1e-6), (loss2, ref_l1(sr2, hr2))

    # 3) Ragged element count: kernel on the aligned prefix + wrapper tail (no pad).
    sr3 = jax.random.normal(k_sr, (3, 5, 9, 13), dtype=jnp.float32)   # 1755 elems
    hr3 = jax.random.normal(k_hr, (3, 5, 9, 13), dtype=jnp.float32)
    loss3 = jax.block_until_ready(l1_loss(sr3, hr3)["loss"])
    assert jnp.allclose(loss3, ref_l1(sr3, hr3), rtol=1e-5, atol=1e-6), (loss3, ref_l1(sr3, hr3))

    # 4) Tiny input (below one aligned chunk): wrapper-only path.
    sr4 = jax.random.normal(k_sr, (2, 3, 7, 5), dtype=jnp.float32)    # 210 elems
    hr4 = jax.random.normal(k_hr, (2, 3, 7, 5), dtype=jnp.float32)
    loss4 = jax.block_until_ready(l1_loss(sr4, hr4)["loss"])
    assert jnp.allclose(loss4, ref_l1(sr4, hr4), rtol=1e-5, atol=1e-6), (loss4, ref_l1(sr4, hr4))

    # 5) bf16 inputs stay bf16 on the HBM path; accumulation is f32.
    sr5 = sr.astype(jnp.bfloat16)
    hr5 = hr.astype(jnp.bfloat16)
    loss5 = jax.block_until_ready(l1_loss(sr5, hr5)["loss"])
    assert jnp.allclose(loss5, ref_l1(sr5, hr5), rtol=1e-5, atol=1e-6), (loss5, ref_l1(sr5, hr5))

    # 6) Mixed dtypes (bf16 SR, f32 HR): both upcast to f32 inside the kernel.
    loss6 = jax.block_until_ready(l1_loss(sr5, hr)["loss"])
    assert jnp.allclose(loss6, ref_l1(sr5, hr), rtol=1e-5, atol=1e-6), (loss6, ref_l1(sr5, hr))

    print("KERNEL_OK")
</pallas_src>

<mosaic_0001>
module attributes {stable_mosaic.version = 11 : i64} {
  func.func @_l1_partial_kernel(%arg0: i32, %arg1: memref<16x128xf32, #tpu.memory_space<vmem>>, %arg2: memref<16x128xf32, #tpu.memory_space<vmem>>, %arg3: memref<1x8x128xf32, #tpu.memory_space<vmem>>) attributes {dimension_semantics = [#tpu.dimension_semantics<parallel>], iteration_bounds = array<i64: 1>, scalar_prefetch = 0 : i64, scratch_operands = 0 : i64, tpu.core_type = #tpu.core_type<tc>, window_params = [{transform_indices = @transform_0, window_bounds = array<i64: 16, 128>}, {transform_indices = @transform_1, window_bounds = array<i64: 16, 128>}, {transform_indices = @transform_2, window_bounds = array<i64: 1, 8, 128>}]} {
    %cst = arith.constant 0.000000e+00 : f32
    %0 = vector.broadcast %cst : f32 to vector<8x128xf32>
    %c0_i32 = arith.constant 0 : i32
    %c16_i32 = arith.constant 16 : i32
    %1 = arith.muli %c0_i32, %c16_i32 : i32
    %2 = tpu.assume_multiple %1, 16 : i32
    %3 = arith.index_cast %2 : i32 to index
    %c0 = arith.constant 0 : index
    %4 = vector.load %arg1[%3, %c0] : memref<16x128xf32, #tpu.memory_space<vmem>>, vector<16x128xf32>
    %5 = arith.index_cast %2 : i32 to index
    %c0_0 = arith.constant 0 : index
    %6 = vector.load %arg2[%5, %c0_0] : memref<16x128xf32, #tpu.memory_space<vmem>>, vector<16x128xf32>
    %7 = arith.subf %4, %6 : vector<16x128xf32>
    %8 = math.absf %7 : vector<16x128xf32>
    %9 = vector.shape_cast %8 : vector<16x128xf32> to vector<2x8x128xf32>
    %cst_1 = arith.constant dense<0.000000e+00> : vector<8x128xf32>
    %10 = vector.multi_reduction <add>, %9, %cst_1 [0] : vector<2x8x128xf32> to vector<8x128xf32>
    %11 = arith.addf %0, %10 : vector<8x128xf32>
    %c1_i32 = arith.constant 1 : i32
    %c0_2 = arith.constant 0 : index
    %c0_3 = arith.constant 0 : index
    %c0_4 = arith.constant 0 : index
    %12 = vector.load %arg3[%c0_2, %c0_3, %c0_4] : memref<1x8x128xf32, #tpu.memory_space<vmem>>, vector<1x8x128xf32>
    %13 = vector.shape_cast %12 : vector<1x8x128xf32> to vector<8x128xf32>
    %14 = vector.shape_cast %11 : vector<8x128xf32> to vector<1x8x128xf32>
    tpu.vector_store %arg3[%c0_2, %c0_3, %c0_4], %14 {strides = array<i32>} : memref<1x8x128xf32, #tpu.memory_space<vmem>>, vector<1x8x128xf32>,
    return
  }
  func.func @transform_0(%arg0: i32) -> (i32, i32) {
    %c0_i32 = arith.constant 0 : i32
    %c0_i32_0 = arith.constant 0 : i32
    return %arg0, %c0_i32 : i32, i32
  }
  func.func @transform_1(%arg0: i32) -> (i32, i32) {
    %c0_i32 = arith.constant 0 : i32
    %c0_i32_0 = arith.constant 0 : i32
    return %arg0, %c0_i32 : i32, i32
  }
  func.func @transform_2(%arg0: i32) -> (i32, i32, i32) {
    %c0_i32 = arith.constant 0 : i32
    %c0_i32_0 = arith.constant 0 : i32
    %c0_i32_1 = arith.constant 0 : i32
    return %arg0, %c0_i32, %c0_i32_0 : i32, i32, i32
  }
}

</mosaic_0001>

<bundles_post_ra>
// kernel: l1_loss.1
= control target key start
LH: loop header
LB: loop body
LE: loop exit
PB: predicated region body
PF: predicated region fallthrough
CT: control target
= control target key end

     0   :  { %s56_s0 = inlined_call_operand.vmem [shape: f32[16,128], index: 0, kind: input, shape index: {}]   ;;  %s57_s1 = inlined_call_operand.vmem [shape: f32[16,128], index: 1, kind: input, shape index: {}]   ;;  %s58_s2 = inlined_call_operand.vmem [shape: f32[1,8,128], index: 2, kind: output, shape index: {}]  }
   0x1   :  { %v11_v0 = vld [vmem:[%s56_s0] sm:$0xff]  ;;  %v12_v1 = vld [vmem:[%s56_s0 + $0x8] sm:$0xff] }
   0x2   :  { %v13_v2 = vld [vmem:[%s57_s1] sm:$0xff]  ;;  %v14_v3 = vld [vmem:[%s57_s1 + $0x8] sm:$0xff] }
   0x3   :  { %v15_v4 = vsub.f32 %v11_v0, %v13_v2  ;;  %v16_v5 = vsub.f32 %v12_v1, %v14_v3 }
   0x5   :  { %v17_v6 = vand.u32 2147483647, %v15_v4  ;;  %v18_v7 = vand.u32 2147483647, %v16_v5 }
   0x7   :  { %v19_v8 = vadd.f32 %v18_v7, %v17_v6 }
   0x9   :  { %21 = vst [vmem:[%s58_s2] sm:$0xff] %v19_v8 }

</bundles_post_ra>
